<compile_context>
chip_gen: v6e
topology: v6e:2x2x1
jax: 0.10.0
libtpu: 0.0.40
codegen_flags: <defaults>
</compile_context>

<pallas_src>
import jax
import jax.numpy as jnp
from jax.experimental import pallas as pl
from jax.experimental.pallas import tpu as pltpu

IN_FEATURES = 64 * 7 * 7  # 3136, fixed by the module


def _round_up(x, m):
    return (x + m - 1) // m * m


def _pad2d(a, rows, cols):
    pr, pc = rows - a.shape[0], cols - a.shape[1]
    if pr == 0 and pc == 0:
        return a
    return jnp.pad(a, ((0, pr), (0, pc)))


def _meta_critic_kernel(x_ref, w1_ref, b1_ref, w2_ref, b2_ref, o_ref):
    # fc1 + ReLU: cast x to bf16 in-kernel (VPU, hidden under DMA/MXU),
    # bf16 x bf16 MXU matmul with f32 accumulation.
    x_bf16 = x_ref[...].astype(jnp.bfloat16)
    h = jnp.dot(x_bf16, w1_ref[...], preferred_element_type=jnp.float32)
    h = jnp.maximum(h + b1_ref[...], 0.0)            # b1 is a (1, H_PAD) row
    # fc_meta_options: bf16 operands, f32 accumulation, lane-dense output.
    q = jnp.dot(h.astype(jnp.bfloat16), w2_ref[...],
                preferred_element_type=jnp.float32)
    o_ref[...] = (q + b2_ref[...]).astype(o_ref.dtype)


def prepare_params(w1_t, b1, w2_t, b2):
    """One-time weight prep: pad lane dims to multiples of 128, cast to bf16.

    w1_t: [3136, H], b1: [H], w2_t: [H, M], b2: [M]  (transposed nn.Linear).
    Do this once (outside the per-step path) so the kernel is the only
    per-call consumer of weight bytes.
    """
    K, H = w1_t.shape
    assert K == IN_FEATURES, "ProcGenMetaCritic expects 64*7*7 flattened features"
    M = w2_t.shape[1]
    H_PAD = _round_up(max(H, 128), 128)
    M_PAD = _round_up(max(M, 128), 128)

    w1p = _pad2d(w1_t.astype(jnp.bfloat16), K, H_PAD)         # [3136, H_PAD] bf16
    b1p = _pad2d(b1.reshape(1, H).astype(jnp.float32), 1, H_PAD)
    w2p = _pad2d(w2_t.astype(jnp.bfloat16), H_PAD, M_PAD)     # [H_PAD, M_PAD] bf16
    b2p = _pad2d(b2.reshape(1, M).astype(jnp.float32), 1, M_PAD)
    return (w1p, b1p, w2p, b2p, M)


def proc_gen_meta_critic(x, params, *, batch_tile=1024):
    """x: [B, 3136] f32, params: output of prepare_params(). Returns [B, M] f32."""
    B, K = x.shape
    assert K == IN_FEATURES, "ProcGenMetaCritic expects 64*7*7 flattened features"
    w1p, b1p, w2p, b2p, M = params
    H_PAD = w1p.shape[1]
    M_PAD = w2p.shape[1]

    # Validate / round the batch tile to a multiple of 8 (f32 sublane pack).
    batch_tile = max(8, (int(batch_tile) // 8) * 8)
    TB = min(batch_tile, _round_up(B, 8))

    # Shrink TB if the streamed double buffers would blow a conservative
    # VMEM budget (keeps the request well inside v7x's 64 MiB/TC).
    budget = 40 << 20
    resident = 2 * K * H_PAD * 2 + 2 * H_PAD * M_PAD * 2 + 2 * (H_PAD + M_PAD) * 4
    per_row = 2 * K * 4 + 2 * M_PAD * 4 + H_PAD * 4
    max_tb = max(8, ((budget - resident) // per_row) // 8 * 8)
    TB = min(TB, int(max_tb))

    n_tiles = pl.cdiv(B, TB)

    # Real VMEM footprint (double-buffered streamed tiles + resident weights).
    vmem_bytes = (
        2 * TB * K * 4              # x tiles, f32 streamed, double-buffered
        + 2 * TB * M_PAD * 4        # out tiles, f32, double-buffered
        + 2 * K * H_PAD * 2         # w1 bf16 (double-buffered even when resident)
        + 2 * H_PAD * M_PAD * 2     # w2 bf16
        + 2 * (H_PAD + M_PAD) * 4   # biases f32
        + TB * H_PAD * 4            # fc1 activation scratch
    )
    # Never request below the computed footprint; only cap when it fits anyway.
    vmem_limit = max(vmem_bytes + (8 << 20), 16 << 20)
    vmem_limit = int(min(vmem_limit, max(48 << 20, vmem_bytes + (2 << 20))))

    cost = pl.CostEstimate(
        flops=2 * B * K * H_PAD + 2 * B * H_PAD * M_PAD,
        transcendentals=0,
        bytes_accessed=(x.size * 4 + w1p.size * 2 + w2p.size * 2
                        + b1p.size * 4 + b2p.size * 4 + B * M_PAD * 4),
    )

    out_padded = pl.pallas_call(
        _meta_critic_kernel,
        out_shape=jax.ShapeDtypeStruct((B, M_PAD), jnp.float32),
        grid_spec=pltpu.PrefetchScalarGridSpec(
            num_scalar_prefetch=0,
            grid=(n_tiles,),
            in_specs=[
                pl.BlockSpec((TB, K), lambda i: (i, 0)),         # x tile (full K)
                pl.BlockSpec((K, H_PAD), lambda i: (0, 0)),      # w1 (resident)
                pl.BlockSpec((1, H_PAD), lambda i: (0, 0)),      # b1 (resident)
                pl.BlockSpec((H_PAD, M_PAD), lambda i: (0, 0)),  # w2 (resident)
                pl.BlockSpec((1, M_PAD), lambda i: (0, 0)),      # b2 (resident)
            ],
            out_specs=pl.BlockSpec((TB, M_PAD), lambda i: (i, 0)),
        ),
        compiler_params=pltpu.CompilerParams(
            dimension_semantics=("parallel",),   # batch tiles: megacore on v7x
            vmem_limit_bytes=vmem_limit,
        ),
        cost_estimate=cost,
    )(x, w1p, b1p, w2p, b2p)

    return out_padded[:, :M]


def init_params(key, hidden_dim, num_meta_options):
    """Deterministic synthetic params matching nn.Linear init (transposed)."""
    k1, k2, k3, k4 = jax.random.split(key, 4)
    bound1 = 1.0 / jnp.sqrt(IN_FEATURES)
    bound2 = 1.0 / jnp.sqrt(hidden_dim)
    w1_t = jax.random.uniform(k1, (IN_FEATURES, hidden_dim), jnp.float32,
                              -bound1, bound1)
    b1 = jax.random.uniform(k2, (hidden_dim,), jnp.float32, -bound1, bound1)
    w2_t = jax.random.uniform(k3, (hidden_dim, num_meta_options), jnp.float32,
                              -bound2, bound2)
    b2 = jax.random.uniform(k4, (num_meta_options,), jnp.float32,
                            -bound2, bound2)
    return w1_t, b1, w2_t, b2


def reference_forward(x, w1_t, b1, w2_t, b2):
    # Mirror the kernel's numerics: bf16 MXU operands, f32 accumulation.
    h = jnp.maximum(
        jnp.dot(x.astype(jnp.bfloat16), w1_t.astype(jnp.bfloat16),
                preferred_element_type=jnp.float32) + b1, 0.0)
    q = jnp.dot(h.astype(jnp.bfloat16), w2_t.astype(jnp.bfloat16),
                preferred_element_type=jnp.float32) + b2
    return q


if __name__ == "__main__":
    batch = 8
    hidden_dim = 32
    num_meta_options = 4

    key = jax.random.PRNGKey(0)
    kx, kp = jax.random.split(key)
    x = jax.random.normal(kx, (batch, IN_FEATURES), dtype=jnp.float32)
    w1_t, b1, w2_t, b2 = init_params(kp, hidden_dim, num_meta_options)

    params = prepare_params(w1_t, b1, w2_t, b2)          # one-time weight prep
    out = jax.block_until_ready(proc_gen_meta_critic(x, params))
    ref = reference_forward(x, w1_t, b1, w2_t, b2)

    assert out.shape == (batch, num_meta_options)
    assert jnp.allclose(out, ref, atol=1e-2, rtol=1e-2), "mismatch vs reference"

    print("KERNEL_OK")
</pallas_src>

<mosaic_0001>
module attributes {stable_mosaic.version = 11 : i64} {
  func.func @_meta_critic_kernel(%arg0: i32, %arg1: memref<8x3136xf32, #tpu.memory_space<vmem>>, %arg2: memref<3136x128xbf16, #tpu.memory_space<vmem>>, %arg3: memref<1x128xf32, #tpu.memory_space<vmem>>, %arg4: memref<128x128xbf16, #tpu.memory_space<vmem>>, %arg5: memref<1x128xf32, #tpu.memory_space<vmem>>, %arg6: memref<8x128xf32, #tpu.memory_space<vmem>>) attributes {dimension_semantics = [#tpu.dimension_semantics<parallel>], iteration_bounds = array<i64: 1>, scalar_prefetch = 0 : i64, scratch_operands = 0 : i64, tpu.core_type = #tpu.core_type<tc>, window_params = [{transform_indices = @transform_0, window_bounds = array<i64: 8, 3136>}, {pipeline_mode = #tpu.pipeline_mode<synchronous>, transform_indices = @transform_1, window_bounds = array<i64: 3136, 128>}, {pipeline_mode = #tpu.pipeline_mode<synchronous>, transform_indices = @transform_2, window_bounds = array<i64: 1, 128>}, {pipeline_mode = #tpu.pipeline_mode<synchronous>, transform_indices = @transform_3, window_bounds = array<i64: 128, 128>}, {pipeline_mode = #tpu.pipeline_mode<synchronous>, transform_indices = @transform_4, window_bounds = array<i64: 1, 128>}, {transform_indices = @transform_5, window_bounds = array<i64: 8, 128>}]} {
    %c0 = arith.constant 0 : index
    %c0_0 = arith.constant 0 : index
    %0 = vector.load %arg1[%c0, %c0_0] : memref<8x3136xf32, #tpu.memory_space<vmem>>, vector<8x3136xf32>
    %1 = arith.truncf %0 : vector<8x3136xf32> to vector<8x3136xbf16>
    %c0_1 = arith.constant 0 : index
    %c0_2 = arith.constant 0 : index
    %2 = vector.load %arg2[%c0_1, %c0_2] : memref<3136x128xbf16, #tpu.memory_space<vmem>>, vector<3136x128xbf16>
    %cst = arith.constant dense<0.000000e+00> : vector<8x128xf32>
    %3 = tpu.matmul %1, %2, %cst {dimension_numbers = #tpu.dot_dimension_numbers<[1], [0], [0], [1], [0, 0, 1, 1], [], []>} : vector<8x3136xbf16>, vector<3136x128xbf16>, vector<8x128xf32> -> vector<8x128xf32>
    %c0_3 = arith.constant 0 : index
    %c0_4 = arith.constant 0 : index
    %4 = vector.load %arg3[%c0_3, %c0_4] : memref<1x128xf32, #tpu.memory_space<vmem>>, vector<1x128xf32>
    %5 = vector.broadcast %4 : vector<1x128xf32> to vector<8x128xf32>
    %6 = arith.addf %3, %5 : vector<8x128xf32>
    %cst_5 = arith.constant 0.000000e+00 : f32
    %7 = vector.broadcast %cst_5 : f32 to vector<8x128xf32>
    %8 = arith.maximumf %6, %7 : vector<8x128xf32>
    %9 = arith.truncf %8 : vector<8x128xf32> to vector<8x128xbf16>
    %c0_6 = arith.constant 0 : index
    %c0_7 = arith.constant 0 : index
    %10 = vector.load %arg4[%c0_6, %c0_7] : memref<128x128xbf16, #tpu.memory_space<vmem>>, vector<128x128xbf16>
    %cst_8 = arith.constant dense<0.000000e+00> : vector<8x128xf32>
    %11 = tpu.matmul %9, %10, %cst_8 {dimension_numbers = #tpu.dot_dimension_numbers<[1], [0], [0], [1], [0, 0, 1, 1], [], []>} : vector<8x128xbf16>, vector<128x128xbf16>, vector<8x128xf32> -> vector<8x128xf32>
    %c0_9 = arith.constant 0 : index
    %c0_10 = arith.constant 0 : index
    %12 = vector.load %arg5[%c0_9, %c0_10] : memref<1x128xf32, #tpu.memory_space<vmem>>, vector<1x128xf32>
    %13 = vector.broadcast %12 : vector<1x128xf32> to vector<8x128xf32>
    %14 = arith.addf %11, %13 : vector<8x128xf32>
    %c0_11 = arith.constant 0 : index
    %c0_12 = arith.constant 0 : index
    %15 = vector.load %arg6[%c0_11, %c0_12] : memref<8x128xf32, #tpu.memory_space<vmem>>, vector<8x128xf32>
    tpu.vector_store %arg6[%c0_11, %c0_12], %14 {strides = array<i32>} : memref<8x128xf32, #tpu.memory_space<vmem>>, vector<8x128xf32>,
    return
  }
  func.func @transform_0(%arg0: i32) -> (i32, i32) {
    %c0_i32 = arith.constant 0 : i32
    %c0_i32_0 = arith.constant 0 : i32
    return %arg0, %c0_i32 : i32, i32
  }
  func.func @transform_1(%arg0: i32) -> (i32, i32) {
    %c0_i32 = arith.constant 0 : i32
    %c0_i32_0 = arith.constant 0 : i32
    %c0_i32_1 = arith.constant 0 : i32
    return %c0_i32, %c0_i32_0 : i32, i32
  }
  func.func @transform_2(%arg0: i32) -> (i32, i32) {
    %c0_i32 = arith.constant 0 : i32
    %c0_i32_0 = arith.constant 0 : i32
    %c0_i32_1 = arith.constant 0 : i32
    return %c0_i32, %c0_i32_0 : i32, i32
  }
  func.func @transform_3(%arg0: i32) -> (i32, i32) {
    %c0_i32 = arith.constant 0 : i32
    %c0_i32_0 = arith.constant 0 : i32
    %c0_i32_1 = arith.constant 0 : i32
    return %c0_i32, %c0_i32_0 : i32, i32
  }
  func.func @transform_4(%arg0: i32) -> (i32, i32) {
    %c0_i32 = arith.constant 0 : i32
    %c0_i32_0 = arith.constant 0 : i32
    %c0_i32_1 = arith.constant 0 : i32
    return %c0_i32, %c0_i32_0 : i32, i32
  }
  func.func @transform_5(%arg0: i32) -> (i32, i32) {
    %c0_i32 = arith.constant 0 : i32
    %c0_i32_0 = arith.constant 0 : i32
    return %arg0, %c0_i32 : i32, i32
  }
}

</mosaic_0001>

<bundles_post_ra>
// kernel: tpu_custom_call.1
= control target key start
LH: loop header
LB: loop body
LE: loop exit
PB: predicated region body
PF: predicated region fallthrough
CT: control target
= control target key end

     0   :  { %10 = vsyncpa [#allocation3], 0  ;;  %s3225_s0 = inlined_call_operand.hbm [shape: f32[8,3136], index: 0, kind: input, shape index: {}]   ;;  %s3226_s1 = inlined_call_operand.hbm [shape: bf16[3136,128], index: 1, kind: input, shape index: {}]   ;;  %s3227_s2 = inlined_call_operand.vmem [shape: f32[1,128], index: 2, kind: input, shape index: {}]   ;;  %s3228_s3 = inlined_call_operand.hbm [shape: bf16[128,128], index: 3, kind: input, shape index: {}]   ;;  %s3229_s4 = inlined_call_operand.vmem [shape: f32[1,128], index: 4, kind: input, shape index: {}]   ;;  %s3230_s5 = inlined_call_operand.hbm [shape: f32[8,128], index: 5, kind: output, shape index: {}]  }
   0x1   :  { %11 = vsyncpa [#allocation6], 0 }
   0x2   :  { %12 = vsyncpa [#allocation4], 0  ;;  %s3155_s18 = smov [#allocation5]  }
   0x3   :  { %s28_s19 = sshll.u32 %s3155_s18, 4  ;;  %s29_s19 = int_to_ptr.vmem [resolvable:$true] %s28_s19 }
   0x4   :  { %s3077_s20 = scalar_lea.vmem %s29_s19, 25088  ;;  %p3082_p1 = scmp.lt.s32.totalorder %s29_s19, %s29_s19 }
   0x5   :  { %p3078_p0 = scmp.ne.s32.totalorder %s29_s19, %s3077_s20  ;;  %p3083_p2 = scmp.lt.s32.totalorder %s3077_s20, %s3077_s20 }
   0x7   :  { %p3084_p3 = por %p3083_p2, %p3082_p1 }
   0x9   :  { %p3085_p4 = pnand %p3084_p3, %p3078_p0 }
   0xb   :  { %3088 = shalt.err (!%p3085_p4)
}
   0xc   :  { %s3156_s21 = smov 64   ;;  %s3157_s22 = smov 4  }
   0xd   :  { %34 = dma.hbm_to_vmem [thread:$0]  %s3226_s1, 25088, %s29_s19, [#allocation6], %s3156_s21, %s3156_s21, %s3157_s22  }
   0xe   :  { %s3158_s25 = smov [#allocation2]   ;;  %s3159_s27 = smov [#allocation7]  }
   0xf   :  { %s19_s26 = sshll.u32 %s3158_s25, 4  ;;  %s42_s28 = sshll.u32 %s3159_s27, 4  ;;  %s20_s26 = int_to_ptr.vmem [resolvable:$true] %s19_s26  ;;  %s43_s28 = int_to_ptr.vmem [resolvable:$true] %s42_s28 }
  0x10   :  { %s3097_s29 = scalar_lea.vmem %s20_s26, 3200  ;;  %p3102_p6 = scmp.lt.s32.totalorder %s20_s26, %s20_s26 }
  0x11   :  { %p3098_p5 = scmp.ne.s32.totalorder %s20_s26, %s3097_s29  ;;  %p3103_p7 = scmp.lt.s32.totalorder %s3097_s29, %s3097_s29 }
  0x13   :  { %p3104_p8 = por %p3103_p7, %p3102_p6 }
  0x15   :  { %p3105_p9 = pnand %p3104_p8, %p3098_p5 }
  0x17   :  { %3108 = shalt.err (!%p3105_p9)
}
  0x18   :  { %22 = dma.hbm_to_vmem [thread:$0]  %s3225_s0, 3200, %s20_s26, [#allocation3]  }
  0x19   :  { %s3117_s7 = scalar_lea.vmem %s43_s28, 1024  ;;  %p3122_p11 = scmp.lt.s32.totalorder %s43_s28, %s43_s28 }
  0x1a   :  { %p3118_p10 = scmp.ne.s32.totalorder %s43_s28, %s3117_s7  ;;  %p3123_p12 = scmp.lt.s32.totalorder %s3117_s7, %s3117_s7 }
  0x1c   :  { %p3124_p13 = por %p3123_p12, %p3122_p11 }
  0x1e   :  { %p3125_p0 = pnand %p3124_p13, %p3118_p10 }
  0x20   :  { %3128 = shalt.err (!%p3125_p0)
}
  0x21   :  { %48 = dma.hbm_to_vmem [thread:$0]  %s3228_s3, 1024, %s43_s28, [#allocation6], %s3156_s21, %s3156_s21, %s3157_s22  }
  0x22   :  { %3149 = dma.done.wait [#allocation3], 3200  }
  0x23   :  { %3150 = vsyncadd [#allocation3], 4294964096 }
  0x24   :  { %3151 = dma.done.wait [#allocation6], 26112  }
  0x25   :  { %3152 = vsyncadd [#allocation6], 4294941184  ;;  %v2865_v0 = vld [vmem:[#allocation5 + $0x78] sm:$0xff]   ;;  %v2869_v4 = vld [vmem:[#allocation5 + $0x70] sm:$0xff]   ;;  %vm3161_vm0 = vmmov 0   ;;  %vm1686_vm1 = vcmask 523264  }
  0x26   :  { %v2866_v1 = vld [vmem:[#allocation5 + $0x38] sm:$0xff]   ;;  %2547 = vmatprep.subr.bf16.mxu0 %v2865_v0  ;;  %v2870_v5 = vld [vmem:[#allocation5 + $0x30] sm:$0xff]   ;;  %v2873_v8 = vld [vmem:[#allocation5 + $0x68] sm:$0xff]   ;;  %s3162_s10 = smov [#allocation8]  }
  0x27   :  { %v2867_v2 = vld [vmem:[#allocation5 + $0xf8] sm:$0xff]   ;;  %2548 = vmatpush3.bf16.msra.mxu0 %v2866_v1  ;;  %v2871_v6 = vld [vmem:[#allocation5 + $0xf0] sm:$0xff]   ;;  %v2874_v9 = vld [vmem:[#allocation5 + $0x28] sm:$0xff]   ;;  %s2330_s11 = sshll.u32 %s3162_s10, 4  ;;  %s2331_s11 = int_to_ptr.vmem [resolvable:$true] %s2330_s11 }
  0x28   :  { %v2868_v3 = vld [vmem:[#allocation5 + $0xb8] sm:$0xff]   ;;  %2569 = vmatprep.subr.bf16.mxu1 %v2867_v2  ;;  %2549 = vmatprep.subr.bf16.mxu0 %v2869_v4  ;;  %v2872_v7 = vld [vmem:[#allocation5 + $0xb0] sm:$0xff]   ;;  %v2875_v10 = vld [vmem:[#allocation5 + $0xe8] sm:$0xff]   ;;  %s3129_s12 = scalar_lea.vmem %s2331_s11, 128  ;;  %p3134_p2 = scmp.lt.s32.totalorder %s2331_s11, %s2331_s11 }
  0x29   :  { %2570 = vmatpush3.bf16.msra.mxu1 %v2868_v3  ;;  %v2876_v11 = vld [vmem:[#allocation5 + $0xa8] sm:$0xff]   ;;  %v2877_v12 = vld [vmem:[#allocation5 + $0x60] sm:$0xff]   ;;  %v2881_v16 = vld [vmem:[#allocation5 + $0x58] sm:$0xff]   ;;  %p3130_p1 = scmp.ne.s32.totalorder %s2331_s11, %s3129_s12  ;;  %p3135_p3 = scmp.lt.s32.totalorder %s3129_s12, %s3129_s12 }
  0x2a   :  { %2571 = vmatprep.subr.bf16.mxu1 %v2871_v6  ;;  %v2878_v13 = vld [vmem:[#allocation5 + $0x20] sm:$0xff]   ;;  %v2882_v17 = vld [vmem:[#allocation5 + $0x18] sm:$0xff]   ;;  %v2885_v20 = vld [vmem:[#allocation5 + $0x50] sm:$0xff]  }
  0x2b   :  { %2550 = vmatpush3.bf16.msra.mxu0 %v2870_v5  ;;  %v2879_v14 = vld [vmem:[#allocation5 + $0xe0] sm:$0xff]   ;;  %v2883_v18 = vld [vmem:[#allocation5 + $0xd8] sm:$0xff]   ;;  %v2886_v21 = vld [vmem:[#allocation5 + $0x10] sm:$0xff]   ;;  %p3136_p4 = por %p3135_p3, %p3134_p2 }
  0x2c   :  { %2551 = vmatprep.subr.bf16.mxu0 %v2873_v8  ;;  %v2880_v15 = vld [vmem:[#allocation5 + $0xa0] sm:$0xff]   ;;  %v2884_v19 = vld [vmem:[#allocation5 + $0x98] sm:$0xff]   ;;  %v2887_v22 = vld [vmem:[#allocation5 + $0xd0] sm:$0xff]  }
  0x2d   :  { %2572 = vmatpush3.bf16.msra.mxu1 %v2872_v7  ;;  %v2888_v23 = vld [vmem:[#allocation5 + $0x90] sm:$0xff]   ;;  %v2889_v24 = vld [vmem:[#allocation5 + $0x48] sm:$0xff]   ;;  %v2893_v28 = vld [vmem:[#allocation5 + $0x40] sm:$0xff]   ;;  %p3137_p5 = pnand %p3136_p4, %p3130_p1 }
  0x2e   :  { %2573 = vmatprep.subr.bf16.mxu1 %v2875_v10  ;;  %v2890_v25 = vld [vmem:[#allocation5 + $0x8] sm:$0xff]   ;;  %v2894_v29 = vld [vmem:[#allocation5] sm:$0xff]   ;;  %v61_v34 = vld [vmem:[#allocation2] sm:$0xff] }
  0x2f   :  { %2552 = vmatpush3.bf16.msra.mxu0 %v2874_v9  ;;  %v2891_v26 = vld [vmem:[#allocation5 + $0xc8] sm:$0xff]   ;;  %v2895_v30 = vld [vmem:[#allocation5 + $0xc0] sm:$0xff]   ;;  %v86_v35 = vpack.c.bf16 %v61_v34, %v61_v34  ;;  %v2897_v36 = vld [vmem:[#allocation5 + $0x178] sm:$0xff]  }
  0x30   :  { %2553 = vmatprep.subr.bf16.mxu0 %v2877_v12  ;;  %v2892_v27 = vld [vmem:[#allocation5 + $0x88] sm:$0xff]   ;;  %v62_v31 = vld [vmem:[#allocation2 + $0x8] sm:$0xff]  ;;  %v64_v37 = vld [vmem:[#allocation2 + $0x18] sm:$0xff] }
  0x31   :  { %2574 = vmatpush3.bf16.msra.mxu1 %v2876_v11  ;;  %v87_v32 = vpack.c.bf16 %v62_v31, %v62_v31  ;;  %v2896_v33 = vld [vmem:[#allocation5 + $0x80] sm:$0xff]   ;;  %v89_v38 = vpack.c.bf16 %v64_v37, %v64_v37  ;;  %v2898_v39 = vld [vmem:[#allocation5 + $0x138] sm:$0xff]   ;;  %v63_v40 = vld [vmem:[#allocation2 + $0x10] sm:$0xff] }
  0x32   :  { %2575 = vmatprep.subr.bf16.mxu1 %v2879_v14  ;;  %v88_v41 = vpack.c.bf16 %v63_v40, %v63_v40  ;;  %v2899_v42 = vld [vmem:[#allocation5 + $0x1f8] sm:$0xff]   ;;  %v2901_v44 = vld [vmem:[#allocation5 + $0x170] sm:$0xff]   ;;  %v2905_v48 = vld [vmem:[#allocation5 + $0x168] sm:$0xff]  }
  0x33   :  { %2554 = vmatpush3.bf16.msra.mxu0 %v2878_v13  ;;  %1722 = vmatprep.mubr.bf16.mxu0 %v87_v32  ;;  %v2900_v43 = vld [vmem:[#allocation5 + $0x1b8] sm:$0xff]   ;;  %v2902_v45 = vld [vmem:[#allocation5 + $0x130] sm:$0xff]   ;;  %v2906_v49 = vld [vmem:[#allocation5 + $0x128] sm:$0xff]  }
  0x34   :  { %2555 = vmatprep.subr.bf16.mxu0 %v2881_v16  ;;  %1762 = vmatprep.mubr.bf16.mxu1 %v89_v38  ;;  %v2903_v46 = vld [vmem:[#allocation5 + $0x1f0] sm:$0xff]   ;;  %v2907_v50 = vld [vmem:[#allocation5 + $0x1e8] sm:$0xff]   ;;  %v2909_v52 = vld [vmem:[#allocation5 + $0x160] sm:$0xff]  }
  0x35   :  { %2576 = vmatpush3.bf16.msra.mxu1 %v2880_v15  ;;  %v2904_v47 = vld [vmem:[#allocation5 + $0x1b0] sm:$0xff]   ;;  %v2908_v51 = vld [vmem:[#allocation5 + $0x1a8] sm:$0xff]   ;;  %v2910_v53 = vld [vmem:[#allocation5 + $0x120] sm:$0xff]  }
  0x36   :  { %2577 = vmatprep.subr.bf16.mxu1 %v2883_v18  ;;  %v2911_v54 = vld [vmem:[#allocation5 + $0x1e0] sm:$0xff]   ;;  %v2913_v56 = vld [vmem:[#allocation5 + $0x158] sm:$0xff]   ;;  %v2917_v60 = vld [vmem:[#allocation5 + $0x150] sm:$0xff]  }
  0x37   :  { %2556 = vmatpush3.bf16.msra.mxu0 %v2882_v17  ;;  %v2912_v55 = vld [vmem:[#allocation5 + $0x1a0] sm:$0xff]   ;;  %v2914_v57 = vld [vmem:[#allocation5 + $0x118] sm:$0xff]   ;;  %v2918_v61 = vld [vmem:[#allocation5 + $0x110] sm:$0xff]  }
  0x38   :  { %2557 = vmatprep.subr.bf16.mxu0 %v2885_v20  ;;  %v2915_v58 = vld [vmem:[#allocation5 + $0x1d8] sm:$0xff]   ;;  %v2919_v62 = vld [vmem:[#allocation5 + $0x1d0] sm:$0xff]   ;;  %v2921_v0 = vld [vmem:[#allocation5 + $0x148] sm:$0xff]  }
  0x39   :  { %2578 = vmatpush3.bf16.msra.mxu1 %v2884_v19  ;;  %v2916_v59 = vld [vmem:[#allocation5 + $0x198] sm:$0xff]   ;;  %v2920_v63 = vld [vmem:[#allocation5 + $0x190] sm:$0xff]   ;;  %v2922_v1 = vld [vmem:[#allocation5 + $0x108] sm:$0xff]  }
  0x3a   :  { %2579 = vmatprep.subr.bf16.mxu1 %v2887_v22  ;;  %v2923_v2 = vld [vmem:[#allocation5 + $0x1c8] sm:$0xff]   ;;  %v2925_v4 = vld [vmem:[#allocation5 + $0x140] sm:$0xff]   ;;  %v65_v10 = vld [vmem:[#allocation2 + $0x20] sm:$0xff] }
  0x3b   :  { %2558 = vmatpush3.bf16.msra.mxu0 %v2886_v21  ;;  %v2924_v3 = vld [vmem:[#allocation5 + $0x188] sm:$0xff]   ;;  %v2926_v5 = vld [vmem:[#allocation5 + $0x100] sm:$0xff]   ;;  %v90_v11 = vpack.c.bf16 %v65_v10, %v65_v10  ;;  %v2929_v12 = vld [vmem:[#allocation5 + $0x278] sm:$0xff]  }
  0x3c   :  { %2559 = vmatprep.subr.bf16.mxu0 %v2889_v24  ;;  %v2927_v6 = vld [vmem:[#allocation5 + $0x1c0] sm:$0xff]   ;;  %v68_v13 = vld [vmem:[#allocation2 + $0x38] sm:$0xff]  ;;  %v2930_v15 = vld [vmem:[#allocation5 + $0x238] sm:$0xff]  }
  0x3d   :  { %2580 = vmatpush3.bf16.msra.mxu1 %v2888_v23  ;;  %v66_v7 = vld [vmem:[#allocation2 + $0x28] sm:$0xff]  ;;  %v93_v14 = vpack.c.bf16 %v68_v13, %v68_v13  ;;  %v67_v16 = vld [vmem:[#allocation2 + $0x30] sm:$0xff]  ;;  %v2931_v18 = vld [vmem:[#allocation5 + $0x2f8] sm:$0xff]  }
  0x3e   :  { %2581 = vmatprep.subr.bf16.mxu1 %v2891_v26  ;;  %v91_v8 = vpack.c.bf16 %v66_v7, %v66_v7  ;;  %v2928_v9 = vld [vmem:[#allocation5 + $0x180] sm:$0xff]   ;;  %v92_v17 = vpack.c.bf16 %v67_v16, %v67_v16  ;;  %v2932_v19 = vld [vmem:[#allocation5 + $0x2b8] sm:$0xff]   ;;  %v2933_v20 = vld [vmem:[#allocation5 + $0x270] sm:$0xff]  }
  0x3f   :  { %2560 = vmatpush3.bf16.msra.mxu0 %v2890_v25  ;;  %v2934_v21 = vld [vmem:[#allocation5 + $0x230] sm:$0xff]   ;;  %v2937_v24 = vld [vmem:[#allocation5 + $0x268] sm:$0xff]   ;;  %v2944_v31 = vld [vmem:[#allocation5 + $0x2a0] sm:$0xff]  }
  0x40   :  { %2561 = vmatprep.subr.bf16.mxu0 %v2893_v28  ;;  %v2935_v22 = vld [vmem:[#allocation5 + $0x2f0] sm:$0xff]   ;;  %v2938_v25 = vld [vmem:[#allocation5 + $0x228] sm:$0xff]   ;;  %v2941_v28 = vld [vmem:[#allocation5 + $0x260] sm:$0xff]  }
  0x41   :  { %2582 = vmatpush3.bf16.msra.mxu1 %v2892_v27  ;;  %v2936_v23 = vld [vmem:[#allocation5 + $0x2b0] sm:$0xff]   ;;  %v2939_v26 = vld [vmem:[#allocation5 + $0x2e8] sm:$0xff]   ;;  %v2945_v32 = vld [vmem:[#allocation5 + $0x258] sm:$0xff]  }
  0x42   :  { %2583 = vmatprep.subr.bf16.mxu1 %v2895_v30  ;;  %v2940_v27 = vld [vmem:[#allocation5 + $0x2a8] sm:$0xff]   ;;  %v2943_v30 = vld [vmem:[#allocation5 + $0x2e0] sm:$0xff]   ;;  %v2947_v34 = vld [vmem:[#allocation5 + $0x2d8] sm:$0xff]  }
  0x43   :  { %2562 = vmatpush3.bf16.msra.mxu0 %v2894_v29  ;;  %v2942_v29 = vld [vmem:[#allocation5 + $0x220] sm:$0xff]   ;;  %v2950_v37 = vld [vmem:[#allocation5 + $0x210] sm:$0xff]   ;;  %v2953_v40 = vld [vmem:[#allocation5 + $0x248] sm:$0xff]  }
  0x44   :  { %2591 = vmatprep.subr.bf16.mxu0 %v2897_v36  ;;  %v2949_v36 = vld [vmem:[#allocation5 + $0x250] sm:$0xff]   ;;  %v2976_v7 = vld [vmem:[#allocation5 + $0x3a0] sm:$0xff]   ;;  %v2979_v10 = vld [vmem:[#allocation5 + $0x3d8] sm:$0xff]  }
  0x45   :  { %2584 = vmatpush3.bf16.msra.mxu1 %v2896_v33  ;;  %v2946_v33 = vld [vmem:[#allocation5 + $0x218] sm:$0xff]   ;;  %v2951_v38 = vld [vmem:[#allocation5 + $0x2d0] sm:$0xff]   ;;  %v2985_v16 = vld [vmem:[#allocation5 + $0x348] sm:$0xff]  }
  0x46   :  { %1723 = vmatmul.mubr.bf16.vlgmr.msra.gmra.mxu0 %v86_v35  ;;  %2613 = vmatprep.subr.bf16.mxu1 %v2899_v42  ;;  %v2948_v35 = vld [vmem:[#allocation5 + $0x298] sm:$0xff]   ;;  %v2955_v42 = vld [vmem:[#allocation5 + $0x2c8] sm:$0xff]   ;;  %v2982_v13 = vld [vmem:[#allocation5 + $0x310] sm:$0xff]  }
  0x47   :  { %2592 = vmatpush3.bf16.msra.mxu0 %v2898_v39  ;;  %1802 = vmatprep.mubr.bf16.mxu0 %v91_v8  ;;  %v2952_v39 = vld [vmem:[#allocation5 + $0x290] sm:$0xff]   ;;  %v2977_v8 = vld [vmem:[#allocation5 + $0x358] sm:$0xff]  }
  0x48   :  { %1763 = vmatmul.mubr.bf16.vlgmr.msra.gmra.mxu1 %v88_v41  ;;  %2593 = vmatprep.subr.bf16.mxu0 %v2901_v44  ;;  %v2954_v41 = vld [vmem:[#allocation5 + $0x208] sm:$0xff]   ;;  %v2957_v44 = vld [vmem:[#allocation5 + $0x240] sm:$0xff]  }
  0x49   :  { %2614 = vmatpush3.bf16.msra.mxu1 %v2900_v43  ;;  %1842 = vmatprep.mubr.bf16.mxu1 %v93_v14  ;;  %v2956_v43 = vld [vmem:[#allocation5 + $0x288] sm:$0xff]   ;;  %v2983_v14 = vld [vmem:[#allocation5 + $0x3d0] sm:$0xff]  }
  0x4a   :  { %2615 = vmatprep.subr.bf16.mxu1 %v2903_v46  ;;  %v2959_v46 = vld [vmem:[#allocation5 + $0x2c0] sm:$0xff]  }
  0x4b   :  { %2594 = vmatpush3.bf16.msra.mxu0 %v2902_v45  ;;  %v2958_v45 = vld [vmem:[#allocation5 + $0x200] sm:$0xff]  }
  0x4c   :  { %2595 = vmatprep.subr.bf16.mxu0 %v2905_v48 }
  0x4d   :  { %2616 = vmatpush3.bf16.msra.mxu1 %v2904_v47  ;;  %v70_v47 = vld [vmem:[#allocation2 + $0x48] sm:$0xff] }
  0x4e   :  { %2617 = vmatprep.subr.bf16.mxu1 %v2907_v50  ;;  %v95_v48 = vpack.c.bf16 %v70_v47, %v70_v47  ;;  %v69_v50 = vld [vmem:[#allocation2 + $0x40] sm:$0xff]  ;;  %v3008_v47 = vld [vmem:[#allocation5 + $0x4a0] sm:$0xff]  }
  0x4f   :  { %2596 = vmatpush3.bf16.msra.mxu0 %v2906_v49  ;;  %v2960_v49 = vld [vmem:[#allocation5 + $0x280] sm:$0xff]  }
  0x50   :  { %2597 = vmatprep.subr.bf16.mxu0 %v2909_v52  ;;  %v2961_v52 = vld [vmem:[#allocation5 + $0x378] sm:$0xff]  }
  0x51   :  { %2618 = vmatpush3.bf16.msra.mxu1 %v2908_v51  ;;  %v94_v51 = vpack.c.bf16 %v69_v50, %v69_v50  ;;  %v3011_v50 = vld [vmem:[#allocation5 + $0x4d8] sm:$0xff]  }
  0x52   :  { %2619 = vmatprep.subr.bf16.mxu1 %v2911_v54 }
  0x53   :  { %2598 = vmatpush3.bf16.msra.mxu0 %v2910_v53  ;;  %v72_v53 = vld [vmem:[#allocation2 + $0x58] sm:$0xff] }
  0x54   :  { %2599 = vmatprep.subr.bf16.mxu0 %v2913_v56  ;;  %v97_v54 = vpack.c.bf16 %v72_v53, %v72_v53  ;;  %v71_v56 = vld [vmem:[#allocation2 + $0x50] sm:$0xff]  ;;  %v3014_v53 = vld [vmem:[#allocation5 + $0x410] sm:$0xff]  }
  0x55   :  { %2620 = vmatpush3.bf16.msra.mxu1 %v2912_v55  ;;  %v2962_v55 = vld [vmem:[#allocation5 + $0x338] sm:$0xff]  }
  0x56   :  { %2621 = vmatprep.subr.bf16.mxu1 %v2915_v58  ;;  %v2963_v58 = vld [vmem:[#allocation5 + $0x3f8] sm:$0xff]  }
  0x57   :  { %2600 = vmatpush3.bf16.msra.mxu0 %v2914_v57  ;;  %v96_v57 = vpack.c.bf16 %v71_v56, %v71_v56  ;;  %v3017_v56 = vld [vmem:[#allocation5 + $0x448] sm:$0xff]  }
  0x58   :  { %2601 = vmatprep.subr.bf16.mxu0 %v2917_v60  ;;  %v2965_v60 = vld [vmem:[#allocation5 + $0x370] sm:$0xff]  }
  0x59   :  { %2622 = vmatpush3.bf16.msra.mxu1 %v2916_v59  ;;  %v2964_v59 = vld [vmem:[#allocation5 + $0x3b8] sm:$0xff]  }
  0x5a   :  { %2623 = vmatprep.subr.bf16.mxu1 %v2919_v62  ;;  %v2967_v62 = vld [vmem:[#allocation5 + $0x3f0] sm:$0xff]  }
  0x5b   :  { %2602 = vmatpush3.bf16.msra.mxu0 %v2918_v61  ;;  %v2966_v61 = vld [vmem:[#allocation5 + $0x330] sm:$0xff]  }
  0x5c   :  { %2603 = vmatprep.subr.bf16.mxu0 %v2921_v0  ;;  %v2969_v0 = vld [vmem:[#allocation5 + $0x368] sm:$0xff]  }
  0x5d   :  { %2624 = vmatpush3.bf16.msra.mxu1 %v2920_v63  ;;  %v2968_v63 = vld [vmem:[#allocation5 + $0x3b0] sm:$0xff]  }
  0x5e   :  { %2625 = vmatprep.subr.bf16.mxu1 %v2923_v2  ;;  %v2971_v2 = vld [vmem:[#allocation5 + $0x3e8] sm:$0xff]  }
  0x5f   :  { %2604 = vmatpush3.bf16.msra.mxu0 %v2922_v1  ;;  %v2970_v1 = vld [vmem:[#allocation5 + $0x328] sm:$0xff]  }
  0x60   :  { %2605 = vmatprep.subr.bf16.mxu0 %v2925_v4  ;;  %v2973_v4 = vld [vmem:[#allocation5 + $0x360] sm:$0xff]  }
  0x61   :  { %2626 = vmatpush3.bf16.msra.mxu1 %v2924_v3  ;;  %v2972_v3 = vld [vmem:[#allocation5 + $0x3a8] sm:$0xff]  }
  0x62   :  { %2627 = vmatprep.subr.bf16.mxu1 %v2927_v6  ;;  %v2975_v6 = vld [vmem:[#allocation5 + $0x3e0] sm:$0xff]  }
  0x63   :  { %2606 = vmatpush3.bf16.msra.mxu0 %v2926_v5  ;;  %v2974_v5 = vld [vmem:[#allocation5 + $0x320] sm:$0xff]  }
  0x64   :  { %2635 = vmatprep.subr.bf16.mxu0 %v2929_v12  ;;  %v2981_v12 = vld [vmem:[#allocation5 + $0x350] sm:$0xff]  }
  0x65   :  { %2628 = vmatpush3.bf16.msra.mxu1 %v2928_v9  ;;  %v2978_v9 = vld [vmem:[#allocation5 + $0x318] sm:$0xff]  }
  0x66   :  { %1803 = vmatmul.mubr.bf16.vlgmr.msra.gmra.mxu0 %v90_v11  ;;  %2657 = vmatprep.subr.bf16.mxu1 %v2931_v18  ;;  %v2980_v11 = vld [vmem:[#allocation5 + $0x398] sm:$0xff]   ;;  %v2987_v18 = vld [vmem:[#allocation5 + $0x3c8] sm:$0xff]  }
  0x67   :  { %2636 = vmatpush3.bf16.msra.mxu0 %v2930_v15  ;;  %1882 = vmatprep.mubr.bf16.mxu0 %v95_v48  ;;  %v2984_v15 = vld [vmem:[#allocation5 + $0x390] sm:$0xff]   ;;  %v3009_v48 = vld [vmem:[#allocation5 + $0x458] sm:$0xff]  }
  0x68   :  { %1843 = vmatmul.mubr.bf16.vlgmr.msra.gmra.mxu1 %v92_v17  ;;  %2637 = vmatprep.subr.bf16.mxu0 %v2933_v20  ;;  %v2986_v17 = vld [vmem:[#allocation5 + $0x308] sm:$0xff]   ;;  %v2989_v20 = vld [vmem:[#allocation5 + $0x340] sm:$0xff]  }
  0x69   :  { %2658 = vmatpush3.bf16.msra.mxu1 %v2932_v19  ;;  %1922 = vmatprep.mubr.bf16.mxu1 %v97_v54  ;;  %v2988_v19 = vld [vmem:[#allocation5 + $0x388] sm:$0xff]   ;;  %v3015_v54 = vld [vmem:[#allocation5 + $0x4d0] sm:$0xff]  }
  0x6a   :  { %2659 = vmatprep.subr.bf16.mxu1 %v2935_v22  ;;  %v2991_v22 = vld [vmem:[#allocation5 + $0x3c0] sm:$0xff]  }
  0x6b   :  { %2638 = vmatpush3.bf16.msra.mxu0 %v2934_v21  ;;  %v2990_v21 = vld [vmem:[#allocation5 + $0x300] sm:$0xff]  }
  0x6c   :  { %2639 = vmatprep.subr.bf16.mxu0 %v2937_v24 }
  0x6d   :  { %2660 = vmatpush3.bf16.msra.mxu1 %v2936_v23  ;;  %v74_v23 = vld [vmem:[#allocation2 + $0x68] sm:$0xff] }
  0x6e   :  { %2661 = vmatprep.subr.bf16.mxu1 %v2939_v26  ;;  %v99_v24 = vpack.c.bf16 %v74_v23, %v74_v23  ;;  %v73_v26 = vld [vmem:[#allocation2 + $0x60] sm:$0xff]  ;;  %v3040_v23 = vld [vmem:[#allocation5 + $0x5a0] sm:$0xff]  }
  0x6f   :  { %2640 = vmatpush3.bf16.msra.mxu0 %v2938_v25  ;;  %v2992_v25 = vld [vmem:[#allocation5 + $0x380] sm:$0xff]  }
  0x70   :  { %2641 = vmatprep.subr.bf16.mxu0 %v2941_v28  ;;  %v2993_v28 = vld [vmem:[#allocation5 + $0x478] sm:$0xff]  }
  0x71   :  { %2662 = vmatpush3.bf16.msra.mxu1 %v2940_v27  ;;  %v98_v27 = vpack.c.bf16 %v73_v26, %v73_v26  ;;  %v3043_v26 = vld [vmem:[#allocation5 + $0x5d8] sm:$0xff]  }
  0x72   :  { %2663 = vmatprep.subr.bf16.mxu1 %v2943_v30 }
  0x73   :  { %2642 = vmatpush3.bf16.msra.mxu0 %v2942_v29  ;;  %v76_v29 = vld [vmem:[#allocation2 + $0x78] sm:$0xff] }
  0x74   :  { %2643 = vmatprep.subr.bf16.mxu0 %v2945_v32  ;;  %v101_v30 = vpack.c.bf16 %v76_v29, %v76_v29  ;;  %v75_v32 = vld [vmem:[#allocation2 + $0x70] sm:$0xff]  ;;  %v3046_v29 = vld [vmem:[#allocation5 + $0x510] sm:$0xff]  }
  0x75   :  { %2664 = vmatpush3.bf16.msra.mxu1 %v2944_v31  ;;  %v2994_v31 = vld [vmem:[#allocation5 + $0x438] sm:$0xff]  }
  0x76   :  { %2665 = vmatprep.subr.bf16.mxu1 %v2947_v34  ;;  %v2995_v34 = vld [vmem:[#allocation5 + $0x4f8] sm:$0xff]  }
  0x77   :  { %2644 = vmatpush3.bf16.msra.mxu0 %v2946_v33  ;;  %v100_v33 = vpack.c.bf16 %v75_v32, %v75_v32  ;;  %v3049_v32 = vld [vmem:[#allocation5 + $0x548] sm:$0xff]  }
  0x78   :  { %2645 = vmatprep.subr.bf16.mxu0 %v2949_v36  ;;  %v2997_v36 = vld [vmem:[#allocation5 + $0x470] sm:$0xff]  }
  0x79   :  { %2666 = vmatpush3.bf16.msra.mxu1 %v2948_v35  ;;  %v2996_v35 = vld [vmem:[#allocation5 + $0x4b8] sm:$0xff]  }
  0x7a   :  { %2667 = vmatprep.subr.bf16.mxu1 %v2951_v38  ;;  %v2999_v38 = vld [vmem:[#allocation5 + $0x4f0] sm:$0xff]  }
  0x7b   :  { %2646 = vmatpush3.bf16.msra.mxu0 %v2950_v37  ;;  %v2998_v37 = vld [vmem:[#allocation5 + $0x430] sm:$0xff]  }
  0x7c   :  { %2647 = vmatprep.subr.bf16.mxu0 %v2953_v40  ;;  %v3001_v40 = vld [vmem:[#allocation5 + $0x468] sm:$0xff]  }
  0x7d   :  { %2668 = vmatpush3.bf16.msra.mxu1 %v2952_v39  ;;  %v3000_v39 = vld [vmem:[#allocation5 + $0x4b0] sm:$0xff]  }
  0x7e   :  { %2669 = vmatprep.subr.bf16.mxu1 %v2955_v42  ;;  %v3003_v42 = vld [vmem:[#allocation5 + $0x4e8] sm:$0xff]  }
  0x7f   :  { %2648 = vmatpush3.bf16.msra.mxu0 %v2954_v41  ;;  %v3002_v41 = vld [vmem:[#allocation5 + $0x428] sm:$0xff]  }
  0x80   :  { %2649 = vmatprep.subr.bf16.mxu0 %v2957_v44  ;;  %v3005_v44 = vld [vmem:[#allocation5 + $0x460] sm:$0xff]  }
  0x81   :  { %2670 = vmatpush3.bf16.msra.mxu1 %v2956_v43  ;;  %v3004_v43 = vld [vmem:[#allocation5 + $0x4a8] sm:$0xff]  }
  0x82   :  { %2671 = vmatprep.subr.bf16.mxu1 %v2959_v46  ;;  %v3007_v46 = vld [vmem:[#allocation5 + $0x4e0] sm:$0xff]  }
  0x83   :  { %2650 = vmatpush3.bf16.msra.mxu0 %v2958_v45  ;;  %v3006_v45 = vld [vmem:[#allocation5 + $0x420] sm:$0xff]  }
  0x84   :  { %2679 = vmatprep.subr.bf16.mxu0 %v2961_v52  ;;  %v3013_v52 = vld [vmem:[#allocation5 + $0x450] sm:$0xff]  }
  0x85   :  { %2672 = vmatpush3.bf16.msra.mxu1 %v2960_v49  ;;  %v3010_v49 = vld [vmem:[#allocation5 + $0x418] sm:$0xff]  }
  0x86   :  { %1883 = vmatmul.mubr.bf16.vlgmr.msra.gmra.mxu0 %v94_v51  ;;  %2701 = vmatprep.subr.bf16.mxu1 %v2963_v58  ;;  %v3012_v51 = vld [vmem:[#allocation5 + $0x498] sm:$0xff]   ;;  %v3019_v58 = vld [vmem:[#allocation5 + $0x4c8] sm:$0xff]  }
  0x87   :  { %2680 = vmatpush3.bf16.msra.mxu0 %v2962_v55  ;;  %1962 = vmatprep.mubr.bf16.mxu0 %v99_v24  ;;  %v3016_v55 = vld [vmem:[#allocation5 + $0x490] sm:$0xff]   ;;  %v3041_v24 = vld [vmem:[#allocation5 + $0x558] sm:$0xff]  }
  0x88   :  { %1923 = vmatmul.mubr.bf16.vlgmr.msra.gmra.mxu1 %v96_v57  ;;  %2681 = vmatprep.subr.bf16.mxu0 %v2965_v60  ;;  %v3018_v57 = vld [vmem:[#allocation5 + $0x408] sm:$0xff]   ;;  %v3021_v60 = vld [vmem:[#allocation5 + $0x440] sm:$0xff]  }
  0x89   :  { %2702 = vmatpush3.bf16.msra.mxu1 %v2964_v59  ;;  %2002 = vmatprep.mubr.bf16.mxu1 %v101_v30  ;;  %v3020_v59 = vld [vmem:[#allocation5 + $0x488] sm:$0xff]   ;;  %v3047_v30 = vld [vmem:[#allocation5 + $0x5d0] sm:$0xff]  }
  0x8a   :  { %2703 = vmatprep.subr.bf16.mxu1 %v2967_v62  ;;  %v3023_v62 = vld [vmem:[#allocation5 + $0x4c0] sm:$0xff]  }
  0x8b   :  { %2682 = vmatpush3.bf16.msra.mxu0 %v2966_v61  ;;  %v3022_v61 = vld [vmem:[#allocation5 + $0x400] sm:$0xff]  }
  0x8c   :  { %2683 = vmatprep.subr.bf16.mxu0 %v2969_v0 }
  0x8d   :  { %2704 = vmatpush3.bf16.msra.mxu1 %v2968_v63  ;;  %v78_v63 = vld [vmem:[#allocation2 + $0x88] sm:$0xff] }
  0x8e   :  { %2705 = vmatprep.subr.bf16.mxu1 %v2971_v2  ;;  %v103_v0 = vpack.c.bf16 %v78_v63, %v78_v63  ;;  %v77_v2 = vld [vmem:[#allocation2 + $0x80] sm:$0xff] }
  0x8f   :  { %2684 = vmatpush3.bf16.msra.mxu0 %v2970_v1  ;;  %v3024_v1 = vld [vmem:[#allocation5 + $0x480] sm:$0xff]  }
  0x90   :  { %2685 = vmatprep.subr.bf16.mxu0 %v2973_v4  ;;  %v3025_v4 = vld [vmem:[#allocation5 + $0x578] sm:$0xff]  }
  0x91   :  { %2706 = vmatpush3.bf16.msra.mxu1 %v2972_v3  ;;  %v102_v3 = vpack.c.bf16 %v77_v2, %v77_v2 }
  0x92   :  { %2707 = vmatprep.subr.bf16.mxu1 %v2975_v6 }
  0x93   :  { %2686 = vmatpush3.bf16.msra.mxu0 %v2974_v5  ;;  %v80_v5 = vld [vmem:[#allocation2 + $0x98] sm:$0xff] }
  0x94   :  { %2687 = vmatprep.subr.bf16.mxu0 %v2977_v8  ;;  %v105_v6 = vpack.c.bf16 %v80_v5, %v80_v5  ;;  %v79_v8 = vld [vmem:[#allocation2 + $0x90] sm:$0xff]  ;;  %v3062_v5 = vld [vmem:[#allocation7 + $0x30] sm:$0xff]  }
  0x95   :  { %2708 = vmatpush3.bf16.msra.mxu1 %v2976_v7  ;;  %v3026_v7 = vld [vmem:[#allocation5 + $0x538] sm:$0xff]  }
  0x96   :  { %2709 = vmatprep.subr.bf16.mxu1 %v2979_v10  ;;  %v3027_v10 = vld [vmem:[#allocation5 + $0x5f8] sm:$0xff]  }
  0x97   :  { %2688 = vmatpush3.bf16.msra.mxu0 %v2978_v9  ;;  %v104_v9 = vpack.c.bf16 %v79_v8, %v79_v8 }
  0x98   :  { %2689 = vmatprep.subr.bf16.mxu0 %v2981_v12  ;;  %v3029_v12 = vld [vmem:[#allocation5 + $0x570] sm:$0xff]  }
  0x99   :  { %2710 = vmatpush3.bf16.msra.mxu1 %v2980_v11  ;;  %v3028_v11 = vld [vmem:[#allocation5 + $0x5b8] sm:$0xff]  }
  0x9a   :  { %2711 = vmatprep.subr.bf16.mxu1 %v2983_v14  ;;  %v3031_v14 = vld [vmem:[#allocation5 + $0x5f0] sm:$0xff]  }
  0x9b   :  { %2690 = vmatpush3.bf16.msra.mxu0 %v2982_v13  ;;  %v3030_v13 = vld [vmem:[#allocation5 + $0x530] sm:$0xff]  }
  0x9c   :  { %2691 = vmatprep.subr.bf16.mxu0 %v2985_v16  ;;  %v3033_v16 = vld [vmem:[#allocation5 + $0x568] sm:$0xff]  }
  0x9d   :  { %2712 = vmatpush3.bf16.msra.mxu1 %v2984_v15  ;;  %v3032_v15 = vld [vmem:[#allocation5 + $0x5b0] sm:$0xff]  }
  0x9e   :  { %2713 = vmatprep.subr.bf16.mxu1 %v2987_v18  ;;  %v3035_v18 = vld [vmem:[#allocation5 + $0x5e8] sm:$0xff]  }
  0x9f   :  { %2692 = vmatpush3.bf16.msra.mxu0 %v2986_v17  ;;  %v3034_v17 = vld [vmem:[#allocation5 + $0x528] sm:$0xff]  }
  0xa0   :  { %2693 = vmatprep.subr.bf16.mxu0 %v2989_v20  ;;  %v3037_v20 = vld [vmem:[#allocation5 + $0x560] sm:$0xff]  }
  0xa1   :  { %2714 = vmatpush3.bf16.msra.mxu1 %v2988_v19  ;;  %v3036_v19 = vld [vmem:[#allocation5 + $0x5a8] sm:$0xff]  }
  0xa2   :  { %2715 = vmatprep.subr.bf16.mxu1 %v2991_v22  ;;  %v3039_v22 = vld [vmem:[#allocation5 + $0x5e0] sm:$0xff]  }
  0xa3   :  { %2694 = vmatpush3.bf16.msra.mxu0 %v2990_v21  ;;  %v3038_v21 = vld [vmem:[#allocation5 + $0x520] sm:$0xff]  }
  0xa4   :  { %2723 = vmatprep.subr.bf16.mxu0 %v2993_v28  ;;  %v3045_v28 = vld [vmem:[#allocation5 + $0x550] sm:$0xff]  }
  0xa5   :  { %2716 = vmatpush3.bf16.msra.mxu1 %v2992_v25  ;;  %v3042_v25 = vld [vmem:[#allocation5 + $0x518] sm:$0xff]  }
  0xa6   :  { %1963 = vmatmul.mubr.bf16.vlgmr.msra.gmra.mxu0 %v98_v27  ;;  %2745 = vmatprep.subr.bf16.mxu1 %v2995_v34  ;;  %v3044_v27 = vld [vmem:[#allocation5 + $0x598] sm:$0xff]   ;;  %v3051_v34 = vld [vmem:[#allocation5 + $0x5c8] sm:$0xff]  }
  0xa7   :  { %2724 = vmatpush3.bf16.msra.mxu0 %v2994_v31  ;;  %2042 = vmatprep.mubr.bf16.mxu0 %v103_v0  ;;  %v3048_v31 = vld [vmem:[#allocation5 + $0x590] sm:$0xff]  }
  0xa8   :  { %2003 = vmatmul.mubr.bf16.vlgmr.msra.gmra.mxu1 %v100_v33  ;;  %2725 = vmatprep.subr.bf16.mxu0 %v2997_v36  ;;  %v3050_v33 = vld [vmem:[#allocation5 + $0x508] sm:$0xff]   ;;  %v3053_v36 = vld [vmem:[#allocation5 + $0x540] sm:$0xff]  }
  0xa9   :  { %2746 = vmatpush3.bf16.msra.mxu1 %v2996_v35  ;;  %2082 = vmatprep.mubr.bf16.mxu1 %v105_v6  ;;  %v3052_v35 = vld [vmem:[#allocation5 + $0x588] sm:$0xff]  }
  0xaa   :  { %2747 = vmatprep.subr.bf16.mxu1 %v2999_v38  ;;  %v3055_v38 = vld [vmem:[#allocation5 + $0x5c0] sm:$0xff]  }
  0xab   :  { %2726 = vmatpush3.bf16.msra.mxu0 %v2998_v37  ;;  %v3054_v37 = vld [vmem:[#allocation5 + $0x500] sm:$0xff]  }
  0xac   :  { %2727 = vmatprep.subr.bf16.mxu0 %v3001_v40 }
  0xad   :  { %2748 = vmatpush3.bf16.msra.mxu1 %v3000_v39  ;;  %v82_v39 = vld [vmem:[#allocation2 + $0xa8] sm:$0xff] }
  0xae   :  { %2749 = vmatprep.subr.bf16.mxu1 %v3003_v42  ;;  %v107_v40 = vpack.c.bf16 %v82_v39, %v82_v39  ;;  %v81_v42 = vld [vmem:[#allocation2 + $0xa0] sm:$0xff] }
  0xaf   :  { %2728 = vmatpush3.bf16.msra.mxu0 %v3002_v41  ;;  %v3056_v41 = vld [vmem:[#allocation5 + $0x580] sm:$0xff]  }
  0xb0   :  { %2729 = vmatprep.subr.bf16.mxu0 %v3005_v44  ;;  %v84_v44 = vld [vmem:[#allocation2 + $0xb8] sm:$0xff] }
  0xb1   :  { %2750 = vmatpush3.bf16.msra.mxu1 %v3004_v43  ;;  %v3160_v43 = vmov 0.0  }
  0xb2   :  { %2751 = vmatprep.subr.bf16.mxu1 %v3007_v46  ;;  %v109_v46 = vpack.c.bf16 %v84_v44, %v84_v44 }
  0xb3   :  { %2730 = vmatpush3.bf16.msra.mxu0 %v3006_v45  ;;  %v106_v45 = vpack.c.bf16 %v81_v42, %v81_v42 }
  0xb4   :  { %2731 = vmatprep.subr.bf16.mxu0 %v3009_v48  ;;  %v83_v48 = vld [vmem:[#allocation2 + $0xb0] sm:$0xff] }
  0xb5   :  { %2752 = vmatpush3.bf16.msra.mxu1 %v3008_v47  ;;  %v3057_v47 = vld [vmem:[#allocation5 + $0x618] sm:$0xff]  }
  0xb6   :  { %2753 = vmatprep.subr.bf16.mxu1 %v3011_v50  ;;  %v3058_v50 = vld [vmem:[#allocation5 + $0x610] sm:$0xff]  }
  0xb7   :  { %2732 = vmatpush3.bf16.msra.mxu0 %v3010_v49  ;;  %v108_v49 = vpack.c.bf16 %v83_v48, %v83_v48 }
  0xb8   :  { %2733 = vmatprep.subr.bf16.mxu0 %v3013_v52  ;;  %v3060_v52 = vld [vmem:[#allocation5 + $0x600] sm:$0xff]  }
  0xb9   :  { %2754 = vmatpush3.bf16.msra.mxu1 %v3012_v51  ;;  %v3059_v51 = vld [vmem:[#allocation5 + $0x608] sm:$0xff]  }
  0xba   :  { %2755 = vmatprep.subr.bf16.mxu1 %v3015_v54 }
  0xbb   :  { %2734 = vmatpush3.bf16.msra.mxu0 %v3014_v53  ;;  %v85_v53 = vld [vmem:[#allocation2 + $0xc0] sm:$0xff] }
  0xbc   :  { %2735 = vmatprep.subr.bf16.mxu0 %v3017_v56  ;;  %v110_v54 = vpack.c.bf16 %v85_v53, %v85_v53  ;;  %v2340_v56 = vld [vmem:[%s3227_s2] ss:$0 sm:$0xff] }
  0xbd   :  { %2756 = vmatpush3.bf16.msra.mxu1 %v3016_v55 }
  0xbe   :  { %2757 = vmatprep.subr.bf16.mxu1 %v3019_v58 }
  0xbf   :  { %2736 = vmatpush3.bf16.msra.mxu0 %v3018_v57 }
  0xc0   :  { %2737 = vmatprep.subr.bf16.mxu0 %v3021_v60 }
  0xc1   :  { %2758 = vmatpush3.bf16.msra.mxu1 %v3020_v59 }
  0xc2   :  { %2759 = vmatprep.subr.bf16.mxu1 %v3023_v62 }
  0xc3   :  { %2738 = vmatpush3.bf16.msra.mxu0 %v3022_v61 }
  0xc4   :  { %2767 = vmatprep.subr.bf16.mxu0 %v3025_v4  ;;  %v3061_v4 = vld [vmem:[#allocation7 + $0x38] sm:$0xff]  }
  0xc5   :  { %2760 = vmatpush3.bf16.msra.mxu1 %v3024_v1 }
  0xc6   :  { %2043 = vmatmul.mubr.bf16.vlgmr.msra.gmra.mxu0 %v102_v3  ;;  %2789 = vmatprep.subr.bf16.mxu1 %v3027_v10 }
  0xc7   :  { %2768 = vmatpush3.bf16.msra.mxu0 %v3026_v7  ;;  %2122 = vmatprep.mubr.bf16.mxu0 %v107_v40 }
  0xc8   :  { %2083 = vmatmul.mubr.bf16.vlgmr.msra.gmra.mxu1 %v104_v9  ;;  %2769 = vmatprep.subr.bf16.mxu0 %v3029_v12 }
  0xc9   :  { %2790 = vmatpush3.bf16.msra.mxu1 %v3028_v11  ;;  %2162 = vmatprep.mubr.bf16.mxu1 %v109_v46  ;;  %v3063_v11 = vld [vmem:[#allocation7 + $0x28] sm:$0xff]  }
  0xca   :  { %2791 = vmatprep.subr.bf16.mxu1 %v3031_v14 }
  0xcb   :  { %2770 = vmatpush3.bf16.msra.mxu0 %v3030_v13 }
  0xcc   :  { %2771 = vmatprep.subr.bf16.mxu0 %v3033_v16 }
  0xcd   :  { %2792 = vmatpush3.bf16.msra.mxu1 %v3032_v15 }
  0xce   :  { %2793 = vmatprep.subr.bf16.mxu1 %v3035_v18  ;;  %v3064_v18 = vld [vmem:[#allocation7 + $0x20] sm:$0xff]  }
  0xcf   :  { %2772 = vmatpush3.bf16.msra.mxu0 %v3034_v17 }
  0xd0   :  { %2773 = vmatprep.subr.bf16.mxu0 %v3037_v20  ;;  %v3065_v20 = vld [vmem:[#allocation7 + $0x18] sm:$0xff]  }
  0xd1   :  { %2794 = vmatpush3.bf16.msra.mxu1 %v3036_v19 }
  0xd2   :  { %2795 = vmatprep.subr.bf16.mxu1 %v3039_v22  ;;  %v3067_v22 = vld [vmem:[#allocation7 + $0x8] sm:$0xff]  }
  0xd3   :  { %2774 = vmatpush3.bf16.msra.mxu0 %v3038_v21  ;;  %v3066_v21 = vld [vmem:[#allocation7 + $0x10] sm:$0xff]  }
  0xd4   :  { %2775 = vmatprep.subr.bf16.mxu0 %v3041_v24 }
  0xd5   :  { %2796 = vmatpush3.bf16.msra.mxu1 %v3040_v23  ;;  %v3068_v23 = vld [vmem:[#allocation7] sm:$0xff]  }
  0xd6   :  { %2797 = vmatprep.subr.bf16.mxu1 %v3043_v26 }
  0xd7   :  { %2776 = vmatpush3.bf16.msra.mxu0 %v3042_v25 }
  0xd8   :  { %2777 = vmatprep.subr.bf16.mxu0 %v3045_v28 }
  0xd9   :  { %2798 = vmatpush3.bf16.msra.mxu1 %v3044_v27 }
  0xda   :  { %2799 = vmatprep.subr.bf16.mxu1 %v3047_v30 }
  0xdb   :  { %2778 = vmatpush3.bf16.msra.mxu0 %v3046_v29 }
  0xdc   :  { %2779 = vmatprep.subr.bf16.mxu0 %v3049_v32 }
  0xdd   :  { %2800 = vmatpush3.bf16.msra.mxu1 %v3048_v31 }
  0xde   :  { %2801 = vmatprep.subr.bf16.mxu1 %v3051_v34 }
  0xdf   :  { %2780 = vmatpush3.bf16.msra.mxu0 %v3050_v33 }
  0xe0   :  { %2781 = vmatprep.subr.bf16.mxu0 %v3053_v36 }
  0xe1   :  { %2802 = vmatpush3.bf16.msra.mxu1 %v3052_v35 }
  0xe2   :  { %2803 = vmatprep.subr.bf16.mxu1 %v3055_v38 }
  0xe3   :  { %2782 = vmatpush3.bf16.msra.mxu0 %v3054_v37 }
  0xe4   :  { %2825 = vmatprep.subr.bf16.mxu0 %v3160_v43 }
  0xe5   :  { %2804 = vmatpush3.bf16.msra.mxu1 %v3056_v41 }
  0xe6   :  { %2837 = vmatprep.subr.bf16.mxu1 %v3160_v43  ;;  %2123 = vmatmul.mubr.bf16.vlgmr.msra.gmra.mxu0 %v106_v45 }
  0xe7   :  { %2826 = vmatpush3.bf16.msra.mxu0 %v3057_v47  ;;  %2833 = vmatprep.mubr.msk.bf16.mxu0 %vm3161_vm0, %v3160_v43 }
  0xe8   :  { %2163 = vmatmul.mubr.bf16.vlgmr.msra.gmra.mxu1 %v108_v49  ;;  %2827 = vmatprep.subr.bf16.mxu0 %v3160_v43 }
  0xe9   :  { %2853 = vmatprep.mubr.msk.bf16.mxu1 %vm3161_vm0, %v3160_v43  ;;  %2838 = vmatpush3.bf16.msra.mxu1 %v3061_v4 }
  0xea   :  { %2839 = vmatprep.subr.bf16.mxu1 %v3160_v43 }
  0xeb   :  { %2828 = vmatpush3.bf16.msra.mxu0 %v3058_v50 }
  0xec   :  { %2829 = vmatprep.subr.bf16.mxu0 %v3160_v43 }
  0xed   :  { %2840 = vmatpush3.bf16.msra.mxu1 %v3062_v5 }
  0xee   :  { %2841 = vmatprep.subr.bf16.mxu1 %v3160_v43 }
  0xef   :  { %2830 = vmatpush3.bf16.msra.mxu0 %v3059_v51 }
  0xf0   :  { %2831 = vmatprep.subr.bf16.mxu0 %v3160_v43 }
  0xf1   :  { %2842 = vmatpush3.bf16.msra.mxu1 %v3063_v11 }
  0xf2   :  { %2843 = vmatprep.subr.bf16.mxu1 %v3160_v43 }
  0xf3   :  { %2832 = vmatpush3.bf16.msra.mxu0 %v3060_v52 }
  0xf5   :  { %2844 = vmatpush3.bf16.msra.mxu1 %v3064_v18 }
  0xf6   :  { %2834 = vmatmul.mubr.msk.bf16.vlgmr.msra.gmra.mxu0 %vm1686_vm1, %v110_v54  ;;  %2845 = vmatprep.subr.bf16.mxu1 %v3160_v43 }
  0xf9   :  { %2846 = vmatpush3.bf16.msra.mxu1 %v3065_v20 }
  0xfa   :  { %2847 = vmatprep.subr.bf16.mxu1 %v3160_v43 }
  0xfd   :  { %2848 = vmatpush3.bf16.msra.mxu1 %v3066_v21 }
  0xfe   :  { %2849 = vmatprep.subr.bf16.mxu1 %v3160_v43 }
 0x101   :  { %2850 = vmatpush3.bf16.msra.mxu1 %v3067_v22 }
 0x102   :  { %2851 = vmatprep.subr.bf16.mxu1 %v3160_v43 }
 0x105   :  { %2852 = vmatpush3.bf16.msra.mxu1 %v3068_v23 }
 0x106   :  { %v2563_v55 = vpop.f32.mrf.mxu0 }
 0x108   :  { %v2564_v57 = vpop.f32.mrf.mxu0  ;;  %v2585_v59 = vpop.f32.mrf.mxu1 }
 0x109   :  { %v2565_v58 = vadd.f32 %v2564_v57, %v2563_v55 }
 0x10a   :  { %v2566_v60 = vpop.f32.mrf.mxu0  ;;  %v2586_v62 = vpop.f32.mrf.mxu1 }
 0x10b   :  { %v1725_v61 = vadd.f32 %v2565_v58, %v2340_v56  ;;  %v2587_v63 = vadd.f32 %v2586_v62, %v2585_v59 }
 0x10c   :  { %v2567_v0 = vpop.f32.mrf.mxu0  ;;  %v2588_v1 = vpop.f32.mrf.mxu1 }
 0x10d   :  { %v1765_v2 = vadd.f32 %v2587_v63, %v1725_v61 }
 0x10e   :  { %v2589_v3 = vpop.f32.mrf.mxu1 }
 0x126   :  { %v2607_v6 = vpop.f32.mrf.mxu0 }
 0x128   :  { %v2608_v7 = vpop.f32.mrf.mxu0  ;;  %v2629_v9 = vpop.f32.mrf.mxu1 }
 0x129   :  { %v2609_v8 = vadd.f32 %v2608_v7, %v2607_v6 }
 0x12a   :  { %v2610_v10 = vpop.f32.mrf.mxu0  ;;  %v2630_v13 = vpop.f32.mrf.mxu1 }
 0x12b   :  { %v1805_v12 = vadd.f32 %v2609_v8, %v1765_v2  ;;  %v2631_v14 = vadd.f32 %v2630_v13, %v2629_v9 }
 0x12c   :  { %v2611_v15 = vpop.f32.mrf.mxu0  ;;  %v2632_v16 = vpop.f32.mrf.mxu1 }
 0x12d   :  { %v1845_v17 = vadd.f32 %v2631_v14, %v1805_v12  ;;  %v2538_v15 = vld [vmem:[%s3229_s4] ss:$0 sm:$0xff] }
 0x12e   :  { %v2633_v19 = vpop.f32.mrf.mxu1 }
 0x146   :  { %v2651_v24 = vpop.f32.mrf.mxu0 }
 0x148   :  { %v2652_v25 = vpop.f32.mrf.mxu0  ;;  %v2673_v26 = vpop.f32.mrf.mxu1 }
 0x149   :  { %v2653_v27 = vadd.f32 %v2652_v25, %v2651_v24 }
 0x14a   :  { %v2654_v28 = vpop.f32.mrf.mxu0  ;;  %v2674_v29 = vpop.f32.mrf.mxu1 }
 0x14b   :  { %v1885_v30 = vadd.f32 %v2653_v27, %v1845_v17  ;;  %v2675_v31 = vadd.f32 %v2674_v29, %v2673_v26 }
 0x14c   :  { %v2655_v32 = vpop.f32.mrf.mxu0  ;;  %v2676_v33 = vpop.f32.mrf.mxu1 }
 0x14d   :  { %v1925_v34 = vadd.f32 %v2675_v31, %v1885_v30 }
 0x14e   :  { %v2677_v35 = vpop.f32.mrf.mxu1 }
 0x166   :  { %v2695_v36 = vpop.f32.mrf.mxu0 }
 0x168   :  { %v2696_v37 = vpop.f32.mrf.mxu0  ;;  %v2717_v39 = vpop.f32.mrf.mxu1 }
 0x169   :  { %v2697_v38 = vadd.f32 %v2696_v37, %v2695_v36 }
 0x16a   :  { %v2698_v40 = vpop.f32.mrf.mxu0  ;;  %v2718_v42 = vpop.f32.mrf.mxu1 }
 0x16b   :  { %v1965_v41 = vadd.f32 %v2697_v38, %v1925_v34  ;;  %v2719_v43 = vadd.f32 %v2718_v42, %v2717_v39 }
 0x16c   :  { %v2699_v44 = vpop.f32.mrf.mxu0  ;;  %v2720_v45 = vpop.f32.mrf.mxu1 }
 0x16d   :  { %v2005_v46 = vadd.f32 %v2719_v43, %v1965_v41 }
 0x16e   :  { %v2721_v47 = vpop.f32.mrf.mxu1 }
 0x186   :  { %v2739_v48 = vpop.f32.mrf.mxu0 }
 0x188   :  { %v2740_v49 = vpop.f32.mrf.mxu0  ;;  %v2761_v50 = vpop.f32.mrf.mxu1 }
 0x189   :  { %v2741_v57 = vadd.f32 %v2740_v49, %v2739_v48 }
 0x18a   :  { %v2742_v51 = vpop.f32.mrf.mxu0  ;;  %v2762_v52 = vpop.f32.mrf.mxu1 }
 0x18b   :  { %v2045_v62 = vadd.f32 %v2741_v57, %v2005_v46  ;;  %v2763_v63 = vadd.f32 %v2762_v52, %v2761_v50 }
 0x18c   :  { %v2743_v53 = vpop.f32.mrf.mxu0  ;;  %v2764_v54 = vpop.f32.mrf.mxu1 }
 0x18d   :  { %v2085_v4 = vadd.f32 %v2763_v63, %v2045_v62 }
 0x18e   :  { %v2765_v55 = vpop.f32.mrf.mxu1 }
 0x1a6   :  { %v2783_v56 = vpop.f32.mrf.mxu0 }
 0x1a8   :  { %v2805_v58 = vpop.f32.mrf.mxu1  ;;  %v2784_v59 = vpop.f32.mrf.mxu0 }
 0x1a9   :  { %v2785_v2 = vadd.f32 %v2784_v59, %v2783_v56 }
 0x1aa   :  { %v2806_v60 = vpop.f32.mrf.mxu1  ;;  %v2786_v61 = vpop.f32.mrf.mxu0 }
 0x1ab   :  { %v2125_v5 = vadd.f32 %v2785_v2, %v2085_v4  ;;  %v2807_v6 = vadd.f32 %v2806_v60, %v2805_v58 }
 0x1ac   :  { %v2808_v0 = vpop.f32.mrf.mxu1  ;;  %v2787_v1 = vpop.f32.mrf.mxu0 }
 0x1ad   :  { %v2165_v7 = vadd.f32 %v2807_v6, %v2125_v5 }
 0x1ae   :  { %v2809_v3 = vpop.f32.mrf.mxu1 }
 0x1b6   :  { %v2204_v8 = vpop.f32.mrf.mxu0 }
 0x1b7   :  { %v2205_v9 = vadd.f32 %v2204_v8, %v2165_v7 }
 0x1b8   :  { %v2835_v10 = vpop.f32.mrf.mxu0 }
 0x1b9   :  { %v2210_v11 = vmax.f32 %v2205_v9, 0.0 }
 0x1ba   :  { %v2207_v12 = vpop.f32.mrf.mxu0 }
 0x1bb   :  { %v2211_v13 = vpack.c.bf16 %v2210_v11, %v2210_v11 }
 0x1bc   :  { %v2836_v14 = vpop.f32.mrf.mxu0 }
 0x1bd   :  { %2854 = vmatmul.mubr.bf16.vlgmr.msra.gmra.mxu1 %v2211_v13 }
 0x27d   :  { %v2317_v16 = vpop.f32.mrf.mxu1 }
 0x27e   :  { %v2318_v17 = vadd.f32 %v2538_v15, %v2317_v16 }
 0x27f   :  { %v2855_v18 = vpop.f32.mrf.mxu1 }
 0x280   :  { %2323 = vst [vmem:[#allocation8] sm:$0xff] %v2318_v17 }
 0x281   :  { %v2320_v19 = vpop.f32.mrf.mxu1 }
 0x282   :  { %3140 = shalt.err (!%p3137_p5)
}
 0x283   :  { %2333 = dma.vmem_to_hbm [thread:$0]  %s2331_s11, 128, %s3230_s5, [#allocation4]   ;;  %v2856_v20 = vpop.f32.mrf.mxu1 }
 0x284   :  { %3153 = dma.done.wait [#allocation4], 128  }
 0x285   :  { %3154 = vsyncadd [#allocation4], 4294967168 }
 0x286   :  { %2337 = vsyncpa [#allocation3], 1 }
 0x287   :  { %2338 = vsyncpa [#allocation6], 1 }
 0x288   :  { %2339 = vsyncpa [#allocation4], 1 }

</bundles_post_ra>
